<compile_context>
chip_gen: v5e
topology: v5e:2x2
jax: 0.10.0
libtpu: 0.0.40
codegen_flags: <defaults>
</compile_context>

<pallas_src>
import functools

import jax
import jax.numpy as jnp
import numpy as np
from jax.experimental import pallas as pl
from jax.experimental.pallas import tpu as pltpu


def _conv2dunit_kernel(patch_ref, w_ref, p_ref, o_ref, *, nb, hw, eps):
    # patch_ref: (NB, Kdim, HW_pad)   zero-padded, lane-dense im2col patches
    # w_ref    : (C_out, Kdim)        im2col weight matrix (row order ci, kh, kw)
    # p_ref    : (C_out, 3)           packed [gamma, beta, alpha]
    # o_ref    : (NB, C_out, HW_pad)  lane-dense padded output
    w = w_ref[...]                                     # MXU operand in input dtype
    gamma = p_ref[:, 0:1].astype(jnp.float32)
    beta = p_ref[:, 1:2].astype(jnp.float32)
    alpha = p_ref[:, 2:3].astype(jnp.float32)
    inv_hw = jnp.float32(1.0 / hw)

    for b in range(nb):  # static unroll: NB samples fused per grid step
        # Single MXU matmul per sample, f32 accumulation.
        acc = jnp.dot(w, patch_ref[b],
                      preferred_element_type=jnp.float32)        # (C_out, HW_pad)

        # InstanceNorm2d stats (biased var).  Padded lanes of `acc` are exactly
        # zero (zero-padded patches, no bias), so summing over HW_pad lanes and
        # dividing by the true HW is exact.
        mean = jnp.sum(acc, axis=1, keepdims=True) * inv_hw
        ex2 = jnp.sum(acc * acc, axis=1, keepdims=True) * inv_hw
        var = jnp.maximum(ex2 - mean * mean, 0.0)

        # Affine InstanceNorm folded into one per-channel scale/shift.
        scale = gamma * jax.lax.rsqrt(var + eps)
        shift = beta - mean * scale
        y = acc * scale + shift

        # Per-channel PReLU.
        y = jnp.where(y >= 0, y, alpha * y)
        o_ref[b] = y.astype(o_ref.dtype)


def conv2dunit_forward(x, w, b, gamma, beta, alpha, *, eps=1e-5):
    """x: (N, C, H, W); w: (C, C, KH, KW); b/gamma/beta/alpha: (C,)."""
    N, C, H, W = x.shape
    Co, Ci, KH, KW = w.shape
    assert Ci == C and Co == C
    H_out = H - KH + 1
    W_out = (W - KW) // 2 + 1
    HW = H_out * W_out
    HW_pad = ((HW + 127) // 128) * 128
    Kdim = Ci * KH * KW

    # Conv bias is cancelled exactly by InstanceNorm's mean subtraction; unused.
    del b

    # ---- wrapper-side im2col (plain JAX, tiny) ------------------------------
    # Lane-dense patches: (N, Ci*KH*KW, HW_pad), zero-padded past HW.
    taps = []
    for i in range(KH):
        for j in range(KW):
            # stride-(1,2) VALID conv: output col wo reads input col 2*wo + j
            taps.append(x[:, :, i:i + H_out, j::2][..., :W_out])  # (N,Ci,H_out,W_out)
    patches = jnp.stack(taps, axis=2)                  # (N, Ci, KH*KW, H_out, W_out)
    patches = patches.reshape(N, Kdim, HW)
    patches = jnp.pad(patches, ((0, 0), (0, 0), (0, HW_pad - HW)))

    # im2col weight matrix, same (ci, kh, kw) row order; MXU operands stay in the
    # activation dtype (bf16-native path on v6e/v7x when the caller feeds bf16).
    w2 = w.reshape(Co, Kdim).astype(x.dtype)
    params = jnp.stack([gamma, beta, alpha], axis=1).astype(jnp.float32)  # (Co, 3)

    # Grid: 2-way parallel over batch (both v7x TensorCores get work); each step
    # owns NB = N // G samples to amortize per-grid-step overhead.
    G = 2 if (N >= 2 and N % 2 == 0) else 1
    NB = N // G

    kernel = functools.partial(_conv2dunit_kernel, nb=NB, hw=HW, eps=eps)

    # Explicit VMEM budget from actual (padded, double-buffered) tile sizes.
    itm = jnp.dtype(x.dtype).itemsize
    _ru = lambda v, m: ((v + m - 1) // m) * m
    est = 2 * (NB * _ru(Kdim, 8) * HW_pad * itm          # patches, double-buffered
               + NB * _ru(Co, 8) * HW_pad * itm          # output, double-buffered
               + _ru(Co, 8) * _ru(Kdim, 128) * itm       # weights
               + _ru(Co, 8) * 128 * 4)                   # params
    est += 4 * NB * _ru(Co, 8) * HW_pad * 4              # f32 epilogue intermediates
    vmem_limit = int(min(32 * 1024 * 1024, max(4 * est, 4 * 1024 * 1024)))

    out_flat = pl.pallas_call(
        kernel,
        out_shape=jax.ShapeDtypeStruct((N, Co, HW_pad), x.dtype),
        grid=(G,),
        in_specs=[
            pl.BlockSpec((NB, Kdim, HW_pad), lambda g: (g, 0, 0)),
            pl.BlockSpec((Co, Kdim), lambda g: (0, 0)),
            pl.BlockSpec((Co, 3), lambda g: (0, 0)),
        ],
        out_specs=pl.BlockSpec((NB, Co, HW_pad), lambda g: (g, 0, 0)),
        compiler_params=pltpu.CompilerParams(
            dimension_semantics=("parallel",),
            vmem_limit_bytes=vmem_limit),
    )(patches, w2, params)

    # Crop the lane padding and restore NCHW (cheap XLA relayout outside kernel).
    return out_flat[:, :, :HW].reshape(N, Co, H_out, W_out)


def _reference(x, w, b, gamma, beta, alpha, eps=1e-5):
    y = jax.lax.conv_general_dilated(
        x, w, window_strides=(1, 2), padding="VALID",
        dimension_numbers=("NCHW", "OIHW", "NCHW"))
    y = y + b[None, :, None, None]
    m = jnp.mean(y, axis=(2, 3), keepdims=True)
    v = jnp.mean((y - m) ** 2, axis=(2, 3), keepdims=True)
    y = (y - m) / jnp.sqrt(v + eps)
    y = y * gamma[None, :, None, None] + beta[None, :, None, None]
    return jnp.where(y >= 0, y, alpha[None, :, None, None] * y)


if __name__ == "__main__":
    N, C, H, W = 2, 4, 16, 16     # small shapes consistent with the module
    K = 3                          # Conv2dunit(k=3, c=4)

    key = jax.random.PRNGKey(0)
    kx, kw, kb, kg, kbe, ka = jax.random.split(key, 6)

    x = jax.random.normal(kx, (N, C, H, W), dtype=jnp.float32)
    # Shapes match nn.Conv2d(c,c,k,(1,2)), nn.InstanceNorm2d(c, affine=True),
    # nn.PReLU(c).
    w = 0.1 * jax.random.normal(kw, (C, C, K, K), dtype=jnp.float32)
    b = 0.1 * jax.random.normal(kb, (C,), dtype=jnp.float32)
    gamma = 1.0 + 0.1 * jax.random.normal(kg, (C,), dtype=jnp.float32)
    beta = 0.1 * jax.random.normal(kbe, (C,), dtype=jnp.float32)
    alpha = 0.25 + 0.05 * jax.random.normal(ka, (C,), dtype=jnp.float32)

    out = conv2dunit_forward(x, w, b, gamma, beta, alpha)
    out = jax.block_until_ready(out)

    ref = jax.block_until_ready(_reference(x, w, b, gamma, beta, alpha))
    assert out.shape == (N, C, H - K + 1, (W - K) // 2 + 1), out.shape
    np.testing.assert_allclose(np.asarray(out), np.asarray(ref),
                               rtol=1e-4, atol=1e-4)
    print("KERNEL_OK")
</pallas_src>

<mosaic_0001>
module attributes {stable_mosaic.version = 11 : i64} {
  func.func @_conv2dunit_kernel(%arg0: i32, %arg1: memref<1x36x128xf32, #tpu.memory_space<vmem>>, %arg2: memref<4x36xf32, #tpu.memory_space<vmem>>, %arg3: memref<4x3xf32, #tpu.memory_space<vmem>>, %arg4: memref<1x4x128xf32, #tpu.memory_space<vmem>>) attributes {dimension_semantics = [#tpu.dimension_semantics<parallel>], iteration_bounds = array<i64: 2>, scalar_prefetch = 0 : i64, scratch_operands = 0 : i64, tpu.core_type = #tpu.core_type<tc>, window_params = [{transform_indices = @transform_0, window_bounds = array<i64: 1, 36, 128>}, {pipeline_mode = #tpu.pipeline_mode<synchronous>, transform_indices = @transform_1, window_bounds = array<i64: 4, 36>}, {pipeline_mode = #tpu.pipeline_mode<synchronous>, transform_indices = @transform_2, window_bounds = array<i64: 4, 3>}, {transform_indices = @transform_3, window_bounds = array<i64: 1, 4, 128>}]} {
    %c0 = arith.constant 0 : index
    %c0_0 = arith.constant 0 : index
    %0 = vector.load %arg2[%c0, %c0_0] : memref<4x36xf32, #tpu.memory_space<vmem>>, vector<4x36xf32>
    %c0_1 = arith.constant 0 : index
    %c0_2 = arith.constant 0 : index
    %1 = vector.load %arg3[%c0_1, %c0_2] : memref<4x3xf32, #tpu.memory_space<vmem>>, vector<4x1xf32>
    %c0_3 = arith.constant 0 : index
    %c1 = arith.constant 1 : index
    %2 = vector.load %arg3[%c0_3, %c1] : memref<4x3xf32, #tpu.memory_space<vmem>>, vector<4x1xf32>
    %c0_4 = arith.constant 0 : index
    %c2 = arith.constant 2 : index
    %3 = vector.load %arg3[%c0_4, %c2] : memref<4x3xf32, #tpu.memory_space<vmem>>, vector<4x1xf32>
    %c0_5 = arith.constant 0 : index
    %c0_6 = arith.constant 0 : index
    %c0_7 = arith.constant 0 : index
    %4 = vector.load %arg1[%c0_5, %c0_6, %c0_7] : memref<1x36x128xf32, #tpu.memory_space<vmem>>, vector<1x36x128xf32>
    %5 = vector.shape_cast %4 : vector<1x36x128xf32> to vector<36x128xf32>
    %cst = arith.constant dense<0.000000e+00> : vector<4x128xf32>
    %6 = tpu.matmul %0, %5, %cst {dimension_numbers = #tpu.dot_dimension_numbers<[1], [0], [0], [1], [0, 0, 1, 1], [], []>} : vector<4x36xf32>, vector<36x128xf32>, vector<4x128xf32> -> vector<4x128xf32>
    %cst_8 = arith.constant dense<0.000000e+00> : vector<4xf32>
    %7 = vector.multi_reduction <add>, %6, %cst_8 [1] : vector<4x128xf32> to vector<4xf32>
    %8 = vector.shape_cast %7 : vector<4xf32> to vector<4x1xf32>
    %cst_9 = arith.constant 0.0102040814 : f32
    %9 = vector.broadcast %cst_9 : f32 to vector<4x1xf32>
    %10 = arith.mulf %8, %9 : vector<4x1xf32>
    %11 = arith.mulf %6, %6 : vector<4x128xf32>
    %cst_10 = arith.constant dense<0.000000e+00> : vector<4xf32>
    %12 = vector.multi_reduction <add>, %11, %cst_10 [1] : vector<4x128xf32> to vector<4xf32>
    %13 = vector.shape_cast %12 : vector<4xf32> to vector<4x1xf32>
    %cst_11 = arith.constant 0.0102040814 : f32
    %14 = vector.broadcast %cst_11 : f32 to vector<4x1xf32>
    %15 = arith.mulf %13, %14 : vector<4x1xf32>
    %16 = arith.mulf %10, %10 : vector<4x1xf32>
    %17 = arith.subf %15, %16 : vector<4x1xf32>
    %cst_12 = arith.constant 0.000000e+00 : f32
    %18 = vector.broadcast %cst_12 : f32 to vector<4x1xf32>
    %19 = arith.maximumf %17, %18 : vector<4x1xf32>
    %cst_13 = arith.constant 9.99999974E-6 : f32
    %20 = vector.broadcast %cst_13 : f32 to vector<4x1xf32>
    %21 = arith.addf %19, %20 : vector<4x1xf32>
    %22 = math.rsqrt %21 : vector<4x1xf32>
    %23 = arith.mulf %1, %22 : vector<4x1xf32>
    %24 = arith.mulf %10, %23 : vector<4x1xf32>
    %25 = arith.subf %2, %24 : vector<4x1xf32>
    %26 = vector.broadcast %23 : vector<4x1xf32> to vector<4x128xf32>
    %27 = arith.mulf %6, %26 : vector<4x128xf32>
    %28 = vector.broadcast %25 : vector<4x1xf32> to vector<4x128xf32>
    %29 = arith.addf %27, %28 : vector<4x128xf32>
    %cst_14 = arith.constant 0.000000e+00 : f32
    %30 = vector.broadcast %cst_14 : f32 to vector<4x128xf32>
    %31 = arith.cmpf oge, %29, %30 : vector<4x128xf32>
    %32 = vector.broadcast %3 : vector<4x1xf32> to vector<4x128xf32>
    %33 = arith.mulf %32, %29 : vector<4x128xf32>
    %34 = arith.select %31, %29, %33 : vector<4x128xi1>, vector<4x128xf32>
    %c0_15 = arith.constant 0 : index
    %c0_16 = arith.constant 0 : index
    %c0_17 = arith.constant 0 : index
    %35 = vector.load %arg4[%c0_15, %c0_16, %c0_17] : memref<1x4x128xf32, #tpu.memory_space<vmem>>, vector<1x4x128xf32>
    %36 = vector.shape_cast %35 : vector<1x4x128xf32> to vector<4x128xf32>
    %37 = vector.shape_cast %34 : vector<4x128xf32> to vector<1x4x128xf32>
    tpu.vector_store %arg4[%c0_15, %c0_16, %c0_17], %37 {strides = array<i32>} : memref<1x4x128xf32, #tpu.memory_space<vmem>>, vector<1x4x128xf32>,
    return
  }
  func.func @transform_0(%arg0: i32) -> (i32, i32, i32) {
    %c0_i32 = arith.constant 0 : i32
    %c0_i32_0 = arith.constant 0 : i32
    %c0_i32_1 = arith.constant 0 : i32
    return %arg0, %c0_i32, %c0_i32_0 : i32, i32, i32
  }
  func.func @transform_1(%arg0: i32) -> (i32, i32) {
    %c0_i32 = arith.constant 0 : i32
    %c0_i32_0 = arith.constant 0 : i32
    %c0_i32_1 = arith.constant 0 : i32
    return %c0_i32, %c0_i32_0 : i32, i32
  }
  func.func @transform_2(%arg0: i32) -> (i32, i32) {
    %c0_i32 = arith.constant 0 : i32
    %c0_i32_0 = arith.constant 0 : i32
    %c0_i32_1 = arith.constant 0 : i32
    return %c0_i32, %c0_i32_0 : i32, i32
  }
  func.func @transform_3(%arg0: i32) -> (i32, i32, i32) {
    %c0_i32 = arith.constant 0 : i32
    %c0_i32_0 = arith.constant 0 : i32
    %c0_i32_1 = arith.constant 0 : i32
    return %arg0, %c0_i32, %c0_i32_0 : i32, i32, i32
  }
}

</mosaic_0001>

<bundles_post_ra>
// kernel: tpu_custom_call.1
= control target key start
LH: loop header
LB: loop body
LE: loop exit
PB: predicated region body
PF: predicated region fallthrough
CT: control target
= control target key end

     0   :  { %8 = vsyncpa [#allocation3], 0  ;;  %s574_s0 = inlined_call_operand.vmem [shape: f32[2,36,128], index: 0, kind: input, shape index: {}]   ;;  %s575_s1 = inlined_call_operand.vmem [shape: f32[4,36], index: 1, kind: input, shape index: {}]   ;;  %s576_s2 = inlined_call_operand.vmem [shape: f32[4,3], index: 2, kind: input, shape index: {}]   ;;  %s577_s3 = inlined_call_operand.hbm [shape: f32[2,4,128], index: 3, kind: output, shape index: {}]  }
   0x1   :  { %10 = vsyncpa [#allocation3 + $0x1], 0  ;;  %s480_s12 = smov 0   ;;  %s482_s13 = smov 0  }
   0x2   :  { %s484_s14 = smov 0   ;;  %s486_s15 = smov 0  }
   0x3 LB: > { %s501_s16 = sadd.s32 4294967295, %s454_s15   ;;  %s330_s17 = sadd.s32 4294967294, %s454_s15   ;;  %s454_s15 = sphi %s486_s15, %s583_s15   ;;  %s450_s14 = sphi %s484_s14, %s582_s14   ;;  %s446_s13 = sphi %s482_s13, %s581_s13   ;;  %s442_s12 = sphi %s480_s12, %s580_s12  }
   0x4   : > { %s505_s18 = sadd.s32 1, %s454_s15   ;;  %s91_s19 = sadd.s32 1, %s450_s14 }
   0x5   : > { %s88_s20 = ssub.s32 %s454_s15, %s505_s18  ;;  %p101_p0 = scmp.ne.s32.totalorder %s450_s14, %s446_s13 }
   0x6   : > { %p89_p1 = scmp.eq.s32.totalorder %s88_s20, 0  ;;  %p102_p2 = scmp.eq.s32.totalorder %s501_s16, 1 }
   0x7   : > { %p107_p3 = scmp.ne.s32.totalorder %s446_s13, %s442_s12  ;;  %p108_p4 = scmp.eq.s32.totalorder %s330_s17, 1 }
   0x8   : > { %s516_s21 = scalar_select %p89_p1, %s450_s14, %s91_s19  }
   0x9   : > { %p518_p5 = por %p102_p2, %p101_p0  ;;  %p522_p6 = por %p108_p4, %p107_p3 }
   0xa   : > { %p333_p7 = scmp.ge.s32.totalorder %s454_s15, 1  ;;  %p140_p8 = scmp.lt.s32.totalorder %s454_s15, 3 }
   0xc   : > { %p141_p9 = pnand %p333_p7, %p140_p8 }
   0xd   : > { %p164_p10 = scmp.lt.s32.totalorder (!%p141_p9), %s501_s16, 1  ;;  %s457_s6 = smov (!%p141_p9), 1  }
   0xe   : > { %144 = sbr.rel (%p141_p9) target bundleno = 538 (0x21a), region = 32  ;;  %s161_s7 = sand.u32 (!%p141_p9), 1, %s446_s13  }
   0xf   : > { %s334_s8 = sshll.u32 (!%p141_p9), %s161_s7, 2  ;;  %s339_s9 = sshll.u32 (!%p141_p9), %s501_s16, 2 }
  0x10   : > { %s266_s17 = scalar_lea.hbm (!%p141_p9), %s577_s3, %s339_s9  ;;  %s163_s19 = scalar_lea.vmem (!%p141_p9), [#allocation2], %s334_s8 }
  0x11   : > { %s268_s20 = sshll.u32 (!%p141_p9), %s163_s19, 4  ;;  %s412_s29 = scalar_lea.hbm (!%p141_p9), %s577_s3, 8  ;;  %s269_s20 = int_to_ptr.vmem [resolvable:$true] %s268_s20 }
  0x13   : > { %s165_s24 = scalar_select %p164_p10, %s501_s16, 1  ;;  %vm180_vm0 = vcmask 1043456   ;;  %v169_v5 = vld [vmem:[%s575_s1] sm:$0xf]  ;;  %vm176_vm1 = vcmask 293888   ;;  %v456_v13 = vmov 0  }
  0x14   : > { %386 = vset.pattern.permute.xlu1 %v456_v13  ;;  %v170_v24 = vld [vmem:[%s576_s2] sm:$0xf]  ;;  %v458_v29 = vmov 1   ;;  %v459_v30 = vmov 2  }
  0x15   : > { %s342_s25 = smul.u32 40, %s165_s24  ;;  %387 = vset.pattern.permute.xlu2 %v458_v29  ;;  %389 = vset.pattern.permute.xlu0 %v459_v30  ;;  %s270_s24 = sshll.u32 %s266_s17, 4  ;;  %s271_s24 = int_to_ptr.hbm [resolvable:$true] %s270_s24 }
  0x16   : > { %s406_s26 = sshra.s32 %s271_s24, 4  ;;  %s407_s26 = int_to_ptr.hbm [resolvable:$true] %s406_s26 }
  0x17   : > { %s168_s28 = scalar_lea.vmem %s574_s0, %s342_s25  ;;  %s256_s25 = scalar_lea.sflag [#allocation3], %s161_s7 }
  0x18   : > { %v175_v0 = vld [vmem:[%s168_s28 + $0x20] sm:$0xf]  ;;  %v174_v1 = vld [vmem:[%s168_s28 + $0x18] sm:$0xff]  ;;  %v173_v2 = vld [vmem:[%s168_s28 + $0x10] sm:$0xff]  ;;  %s408_s16 = scalar_lea.hbm %s407_s26, 4  ;;  %p413_p0 = scmp.lt.s32.totalorder %s407_s26, %s577_s3 }
  0x19   : > { %336 = vmatpush.msk.msra.mxu0 %vm180_vm0, %v175_v0  ;;  %v172_v3 = vld [vmem:[%s168_s28 + $0x8] sm:$0xff]  ;;  %v171_v4 = vld [vmem:[%s168_s28] sm:$0xff]  ;;  %p409_p11 = scmp.ne.s32.totalorder %s407_s26, %s408_s16  ;;  %p414_p1 = scmp.lt.s32.totalorder %s412_s29, %s408_s16 }
  0x1b   : > { %196 = vmatpush.msra.mxu0 %v174_v1  ;;  %p410_p12 = pnand %p409_p11, %p518_p5  ;;  %p415_p2 = por %p414_p1, %p413_p0 }
  0x1d   : > { %197 = vmatpush.msra.mxu0 %v173_v2  ;;  %p411_p13 = pneg %p410_p12 }
  0x1f   : > { %198 = vmatpush.msra.mxu0 %v172_v3  ;;  %p416_p3 = pnand %p415_p2, %p411_p13 }
  0x21   : > { %199 = vmatpush.msra.mxu0 %v171_v4 }
  0x22   : > { %337 = vmatmul.msk.f32.vlgmr.msra.gmra.mxu0 %vm176_vm1, %v169_v5 }
  0x9f   : > { %v201_v6 = vpop.f32.mrf.mxu0 }
  0xa0   : > { %v204_v7 = vsel %vm180_vm0, %v201_v6, 0.0  ;;  %v208_v8 = vmul.f32 %v201_v6, %v201_v6 }
  0xa1   : > { %205 = vadd.xlane.f32.xlu0 %v204_v7 }
  0xa2   : > { %v209_v9 = vsel %vm180_vm0, %v208_v8, 0.0 }
  0xa9   : > { %210 = vadd.xlane.f32.xlu0 %v209_v9 }
 0x114   : > { %v206_v10 = vpop.xlane.xlu0 %205 }
 0x115   : > { %v207_v11 = vmul.f32 0.010204081, %v206_v10 }
 0x117   : > { %v213_v14 = vmul.f32 %v207_v11, %v207_v11 }
 0x11c   : > { %v211_v12 = vpop.xlane.xlu0 %210 }
 0x11d   : > { %v212_v15 = vmul.f32 0.010204081, %v211_v12 }
 0x11f   : > { %v214_v16 = vsub.f32 %v212_v15, %v213_v14 }
 0x121   : > { %v215_v17 = vmax.f32 %v214_v16, 0.0 }
 0x123   : > { %v216_v18 = vadd.f32 1e-05, %v215_v17 }
 0x125   : > { %390 = vrsqrt.f32 %v216_v18  ;;  %vm223_vm3 = vweird.f32 %v216_v18 }
 0x12b   : > { %v391_v19 = vpop.eup %390 }
 0x12c   : > { %v218_v20 = vmul.f32 %v391_v19, %v216_v18  ;;  %vm224_vm2 = vweird.f32 %v391_v19 }
 0x12d   : > { %vm225_vm4 = vmor %vm223_vm3, %vm224_vm2 }
 0x12e   : > { %v219_v21 = vmul.f32 %v391_v19, %v218_v20 }
 0x130   : > { %v220_v22 = vmul.f32 0.5, %v219_v21 }
 0x132   : > { %v221_v23 = vsub.f32 1.5, %v220_v22 }
 0x134   : > { %v222_v25 = vmul.f32 %v391_v19, %v221_v23 }
 0x136   : > { %v226_v26 = vsel %vm225_vm4, %v391_v19, %v222_v25 }
 0x137   : > { %v227_v27 = vmul.f32 %v226_v26, %v170_v24 }
 0x139   : > { %v228_v28 = vmul.f32 %v227_v27, %v207_v11 }
 0x13b   : > { %230 = vrot.lane.b32.xlu1 %v228_v28, %s457_s6 }
 0x143   : > { %236 = vperm.xlu1 %386, %v227_v27  }
 0x1ad   : > { %v231_v31 = vpop.permute.xlu1 %230 }
 0x1ae   : > { %v233_v32 = vsub.f32 %v170_v24, %v231_v31 }
 0x1b0   : > { %242 = vperm.xlu2 %387, %v233_v32  }
 0x1b5   : > { %v237_v34 = vpop.permute.xlu1 %236 }
 0x1b6   : > { %v239_v35 = vmul.f32 %v237_v34, %v201_v6 }
 0x1b8   : > { %388 = vset.pattern.permute.xlu2 %v459_v30 }
 0x1b9   : > { %249 = vperm.xlu2 %388, %v170_v24  }
 0x20a   : > { %v243_v33 = vpop.permute.xlu2 %242 }
 0x20b   : > { %v245_v36 = vadd.f32 %v243_v33, %v239_v35 }
 0x20d   : > { %vm246_vm5 = vcmp.ge.f32.partialorder %v245_v36, 0.0 }
 0x213   : > { %v250_v37 = vpop.permute.xlu2 %249 }
 0x214   : > { %v252_v38 = vmul.f32 %v250_v37, %v245_v36 }
 0x216   : > { %v253_v39 = vsel %vm246_vm5, %v245_v36, %v252_v38 }
 0x217   : > { %254 = vst [vmem:[%s163_s19] sm:$0xf] %v253_v39 }
 0x218   : > { %419 = shalt.err (!%p416_p3)
}
 0x219   : > { %343 = dma.vmem_to_hbm [thread:$0]  (%p518_p5), %s269_s20, 64, %s271_s24, %s256_s25  }
 0x21a PF: > { %p349_p4 = scmp.ge.s32.totalorder %s454_s15, 2  ;;  %s282_s5 = sand.u32 1, %s442_s12  }
 0x21b   : > { %s283_s6 = scalar_lea.sflag [#allocation3], %s282_s5 }
 0x21c   : > { %p346_p7 = pnand %p349_p4, %p522_p6 }
 0x21e   : > { %p347_p8 = pneg %p346_p7 }
 0x220   : > { %437 = dma.done.wait (%p347_p8), %s283_s6, 64  }
 0x221   : > { %439 = vsyncadd (%p347_p8), %s283_s6, 4294967232  ;;  %p13_p9 = scmp.ge.s32.totalorder %s505_s18, 4   ;;  %s580_s12 = smov %s446_s13 }
 0x222   : > { %s581_s13 = smov %s450_s14  ;;  %s582_s14 = smov %s516_s21 }
 0x223   : > { %s583_s15 = smov %s505_s18  ;;  %15 = sbr.rel (!%p13_p9) target bundleno = 3 (0x3), region = 67 }
 0x228   :  { %289 = vsyncpa [#allocation3], 1 }
 0x229   :  { %291 = vsyncpa [#allocation3 + $0x1], 1 }

</bundles_post_ra>
